<compile_context>
chip_gen: v7x
topology: tpu7x:2x2x1
jax: 0.10.0
libtpu: 0.0.40
codegen_flags: <defaults>
</compile_context>

<pallas_src>
import functools

import jax
import jax.numpy as jnp
from jax import lax
from jax.experimental import pallas as pl
from jax.experimental.pallas import tpu as pltpu

DIMS = (7, 20, 30, 10, 2)
CHUNK = 512   # lane-axis chunk computed fully in vregs (multiple of 128)


def mlp_kernel(x_ref,
               w1_ref, b1_ref,
               w2_ref, b2_ref,
               w3_ref, b3_ref,
               w4_ref, b4_ref,
               o_ref):
    """Whole MLP hot path on one batch tile, batch on the lane axis.

    x_ref: [7, tm] (bf16 or f32); w_i: [out_i, in_i] (PyTorch layout, same
    dtype as x); b_i: [out_i, 1] f32; o_ref: [2, tm] f32 (lane-dense store).
    The lane axis is walked in CHUNK-wide slices so intermediates never spill.
    """
    cdt = w1_ref.dtype                       # compute/feed dtype for the MXU
    w1 = w1_ref[...]; b1 = b1_ref[...]
    w2 = w2_ref[...]; b2 = b2_ref[...]
    w3 = w3_ref[...]; b3 = b3_ref[...]
    w4 = w4_ref[...]; b4 = b4_ref[...]

    n_chunks = x_ref.shape[1] // CHUNK       # static (block width % CHUNK == 0)

    def body(c, carry):
        off = pl.multiple_of(c * CHUNK, 128)
        x = x_ref[:, pl.ds(off, CHUNK)]      # native dtype straight to the MXU

        h = jnp.dot(w1, x, preferred_element_type=jnp.float32) + b1
        h = jnp.maximum(h, 0.0).astype(cdt)

        h = jnp.dot(w2, h, preferred_element_type=jnp.float32) + b2
        h = jnp.maximum(h, 0.0).astype(cdt)

        h = jnp.dot(w3, h, preferred_element_type=jnp.float32) + b3
        h = jnp.maximum(h, 0.0).astype(cdt)

        z = jnp.dot(w4, h, preferred_element_type=jnp.float32) + b4
        o_ref[:, pl.ds(off, CHUNK)] = z.astype(o_ref.dtype)
        return carry

    lax.fori_loop(0, n_chunks, body, 0)


@functools.partial(jax.jit, static_argnames=("tm", "stream_bf16"))
def mlp_forward(x, params, tm=16384, stream_bf16=True):
    """x: [N, 7] float32.  params: w1..w4 as [out, in], b1..b4 as [out, 1].

    Returns [N, 2] float32, matching the PyTorch MLP forward.
    """
    n, d_in = x.shape
    assert d_in == DIMS[0]
    assert tm % CHUNK == 0 and tm >= CHUNK, "tm must be a positive multiple of CHUNK"
    d_out = DIMS[-1]

    cdt = jnp.bfloat16 if stream_bf16 else jnp.float32

    # Cast BEFORE the transpose so the XLA transpose pass moves half the bytes.
    xt = x.astype(cdt).T                                  # [7, N]
    ws = [params[f"w{i}"].astype(cdt) for i in range(1, 5)]
    bs = [params[f"b{i}"] for i in range(1, 5)]           # biases stay f32

    # Pad the batch to a CHUNK-aligned multiple of the effective tile and pick
    # tile/grid: amortize per-step overhead with big tiles, but keep >= 2 grid
    # steps when the batch allows so v7x's two TensorCores both get work.
    n_pad_c = -(-n // CHUNK) * CHUNK
    min_steps = 2 if n_pad_c >= 2 * CHUNK else 1
    grid_m = max(min_steps, -(-n_pad_c // tm))
    tm_eff = -(-(-(-n_pad_c // grid_m)) // CHUNK) * CHUNK  # ceil/grid, CHUNK-aligned
    n_pad = grid_m * tm_eff
    if n_pad != n:
        xt = jnp.pad(xt, ((0, 0), (0, n_pad - n)))

    flops_per_row = 2 * sum(DIMS[i] * DIMS[i + 1] for i in range(len(DIMS) - 1))
    w_bytes = sum(w.size * jnp.dtype(w.dtype).itemsize for w in ws) \
            + sum(b.size * 4 for b in bs)
    cost = pl.CostEstimate(
        flops=flops_per_row * n_pad,
        transcendentals=0,
        bytes_accessed=n_pad * (DIMS[0] * xt.dtype.itemsize + d_out * 4) + w_bytes,
    )

    def full_spec(a):
        # Tiny weights/biases: full array, resident across all grid steps.
        return pl.BlockSpec(a.shape, lambda i: (0, 0))

    out_t = pl.pallas_call(
        mlp_kernel,
        out_shape=jax.ShapeDtypeStruct((d_out, n_pad), jnp.float32),
        grid_spec=pltpu.PrefetchScalarGridSpec(
            num_scalar_prefetch=0,
            grid=(grid_m,),
            in_specs=[
                pl.BlockSpec((DIMS[0], tm_eff), lambda i: (0, i)),   # x tile [7, tm]
                full_spec(ws[0]), full_spec(bs[0]),
                full_spec(ws[1]), full_spec(bs[1]),
                full_spec(ws[2]), full_spec(bs[2]),
                full_spec(ws[3]), full_spec(bs[3]),
            ],
            out_specs=pl.BlockSpec((d_out, tm_eff), lambda i: (0, i)),  # [2, tm]
        ),
        compiler_params=pltpu.CompilerParams(
            dimension_semantics=("parallel",),
            vmem_limit_bytes=32 * 1024 * 1024,   # safe on v5e/v6e/v7x; usage << 1 MiB
        ),
        cost_estimate=cost,
    )(xt,
      ws[0], bs[0],
      ws[1], bs[1],
      ws[2], bs[2],
      ws[3], bs[3])

    # Drop batch padding and restore [N, 2].
    return out_t[:, :n].T


def init_params(key):
    """nn.Linear default init: U(-1/sqrt(fan_in), 1/sqrt(fan_in)).

    Weights kept in PyTorch [out, in] layout; biases as [out, 1].
    """
    params = {}
    keys = jax.random.split(key, 2 * (len(DIMS) - 1))
    for layer in range(len(DIMS) - 1):
        fan_in, fan_out = DIMS[layer], DIMS[layer + 1]
        bound = 1.0 / jnp.sqrt(jnp.float32(fan_in))
        wk, bk = keys[2 * layer], keys[2 * layer + 1]
        params[f"w{layer + 1}"] = jax.random.uniform(
            wk, (fan_out, fan_in), jnp.float32, -bound, bound)
        params[f"b{layer + 1}"] = jax.random.uniform(
            bk, (fan_out, 1), jnp.float32, -bound, bound)
    return params


def mlp_reference(x, params):
    """Pure-JAX reference (same math as the PyTorch forward)."""
    h = jnp.maximum(x @ params["w1"].T + params["b1"].T, 0.0)
    h = jnp.maximum(h @ params["w2"].T + params["b2"].T, 0.0)
    h = jnp.maximum(h @ params["w3"].T + params["b3"].T, 0.0)
    return h @ params["w4"].T + params["b4"].T


if __name__ == "__main__":
    key = jax.random.PRNGKey(0)
    pkey, k1, k2, k3 = jax.random.split(key, 4)

    params = init_params(pkey)

    # f32 path, small lane-aligned batch (single tile, single chunk).
    x1 = jax.random.normal(k1, (64, 7), jnp.float32)
    out1 = jax.block_until_ready(mlp_forward(x1, params, stream_bf16=False))
    ref1 = mlp_reference(x1, params)
    assert out1.shape == (64, 2)
    assert jnp.allclose(out1, ref1, atol=1e-5, rtol=1e-5), "mismatch vs reference (f32)"

    # Default bf16-streaming path, ragged batch (exercises padding).
    x2 = jax.random.normal(k2, (200, 7), jnp.float32)
    out2 = jax.block_until_ready(mlp_forward(x2, params))
    ref2 = mlp_reference(x2, params)
    assert out2.shape == (200, 2)
    assert jnp.allclose(out2, ref2, atol=1e-1, rtol=1e-1), "mismatch vs reference (bf16, ragged)"

    # Default bf16 path, multi-grid-step + multi-chunk (v7x 2-TC split path).
    x3 = jax.random.normal(k3, (1537, 7), jnp.float32)
    out3 = jax.block_until_ready(mlp_forward(x3, params))
    ref3 = mlp_reference(x3, params)
    assert out3.shape == (1537, 2)
    assert jnp.allclose(out3, ref3, atol=1e-1, rtol=1e-1), "mismatch vs reference (bf16, multi-tile)"

    print("KERNEL_OK")
</pallas_src>

<mosaic_0001>
module attributes {stable_mosaic.version = 11 : i64} {
  func.func @mlp_kernel(%arg0: i32, %arg1: memref<7x512xf32, #tpu.memory_space<vmem>>, %arg2: memref<20x7xf32, #tpu.memory_space<vmem>>, %arg3: memref<20x1xf32, #tpu.memory_space<vmem>>, %arg4: memref<30x20xf32, #tpu.memory_space<vmem>>, %arg5: memref<30x1xf32, #tpu.memory_space<vmem>>, %arg6: memref<10x30xf32, #tpu.memory_space<vmem>>, %arg7: memref<10x1xf32, #tpu.memory_space<vmem>>, %arg8: memref<2x10xf32, #tpu.memory_space<vmem>>, %arg9: memref<2x1xf32, #tpu.memory_space<vmem>>, %arg10: memref<2x512xf32, #tpu.memory_space<vmem>>) attributes {dimension_semantics = [#tpu.dimension_semantics<parallel>], iteration_bounds = array<i64: 1>, scalar_prefetch = 0 : i64, scratch_operands = 0 : i64, tpu.core_type = #tpu.core_type<tc>, window_params = [{transform_indices = @transform_0, window_bounds = array<i64: 7, 512>}, {pipeline_mode = #tpu.pipeline_mode<synchronous>, transform_indices = @transform_1, window_bounds = array<i64: 20, 7>}, {pipeline_mode = #tpu.pipeline_mode<synchronous>, transform_indices = @transform_2, window_bounds = array<i64: 20, 1>}, {pipeline_mode = #tpu.pipeline_mode<synchronous>, transform_indices = @transform_3, window_bounds = array<i64: 30, 20>}, {pipeline_mode = #tpu.pipeline_mode<synchronous>, transform_indices = @transform_4, window_bounds = array<i64: 30, 1>}, {pipeline_mode = #tpu.pipeline_mode<synchronous>, transform_indices = @transform_5, window_bounds = array<i64: 10, 30>}, {pipeline_mode = #tpu.pipeline_mode<synchronous>, transform_indices = @transform_6, window_bounds = array<i64: 10, 1>}, {pipeline_mode = #tpu.pipeline_mode<synchronous>, transform_indices = @transform_7, window_bounds = array<i64: 2, 10>}, {pipeline_mode = #tpu.pipeline_mode<synchronous>, transform_indices = @transform_8, window_bounds = array<i64: 2, 1>}, {transform_indices = @transform_9, window_bounds = array<i64: 2, 512>}]} {
    %c0 = arith.constant 0 : index
    %c0_0 = arith.constant 0 : index
    %0 = vector.load %arg2[%c0, %c0_0] : memref<20x7xf32, #tpu.memory_space<vmem>>, vector<20x7xf32>
    %c0_1 = arith.constant 0 : index
    %c0_2 = arith.constant 0 : index
    %1 = vector.load %arg3[%c0_1, %c0_2] : memref<20x1xf32, #tpu.memory_space<vmem>>, vector<20x1xf32>
    %c0_3 = arith.constant 0 : index
    %c0_4 = arith.constant 0 : index
    %2 = vector.load %arg4[%c0_3, %c0_4] : memref<30x20xf32, #tpu.memory_space<vmem>>, vector<30x20xf32>
    %c0_5 = arith.constant 0 : index
    %c0_6 = arith.constant 0 : index
    %3 = vector.load %arg5[%c0_5, %c0_6] : memref<30x1xf32, #tpu.memory_space<vmem>>, vector<30x1xf32>
    %c0_7 = arith.constant 0 : index
    %c0_8 = arith.constant 0 : index
    %4 = vector.load %arg6[%c0_7, %c0_8] : memref<10x30xf32, #tpu.memory_space<vmem>>, vector<10x30xf32>
    %c0_9 = arith.constant 0 : index
    %c0_10 = arith.constant 0 : index
    %5 = vector.load %arg7[%c0_9, %c0_10] : memref<10x1xf32, #tpu.memory_space<vmem>>, vector<10x1xf32>
    %c0_11 = arith.constant 0 : index
    %c0_12 = arith.constant 0 : index
    %6 = vector.load %arg8[%c0_11, %c0_12] : memref<2x10xf32, #tpu.memory_space<vmem>>, vector<2x10xf32>
    %c0_13 = arith.constant 0 : index
    %c0_14 = arith.constant 0 : index
    %7 = vector.load %arg9[%c0_13, %c0_14] : memref<2x1xf32, #tpu.memory_space<vmem>>, vector<2x1xf32>
    %c0_i32 = arith.constant 0 : i32
    %c512_i32 = arith.constant 512 : i32
    %8 = arith.muli %c0_i32, %c512_i32 : i32
    %9 = tpu.assume_multiple %8, 128 : i32
    %c0_15 = arith.constant 0 : index
    %10 = arith.index_cast %9 : i32 to index
    %11 = vector.load %arg1[%c0_15, %10] : memref<7x512xf32, #tpu.memory_space<vmem>>, vector<7x512xf32>
    %cst = arith.constant dense<0.000000e+00> : vector<20x512xf32>
    %12 = tpu.matmul %0, %11, %cst {dimension_numbers = #tpu.dot_dimension_numbers<[1], [0], [0], [1], [0, 0, 1, 1], [], []>} : vector<20x7xf32>, vector<7x512xf32>, vector<20x512xf32> -> vector<20x512xf32>
    %13 = vector.broadcast %1 : vector<20x1xf32> to vector<20x512xf32>
    %14 = arith.addf %12, %13 : vector<20x512xf32>
    %cst_16 = arith.constant 0.000000e+00 : f32
    %15 = vector.broadcast %cst_16 : f32 to vector<20x512xf32>
    %16 = arith.maximumf %14, %15 : vector<20x512xf32>
    %cst_17 = arith.constant dense<0.000000e+00> : vector<30x512xf32>
    %17 = tpu.matmul %2, %16, %cst_17 {dimension_numbers = #tpu.dot_dimension_numbers<[1], [0], [0], [1], [0, 0, 1, 1], [], []>} : vector<30x20xf32>, vector<20x512xf32>, vector<30x512xf32> -> vector<30x512xf32>
    %18 = vector.broadcast %3 : vector<30x1xf32> to vector<30x512xf32>
    %19 = arith.addf %17, %18 : vector<30x512xf32>
    %cst_18 = arith.constant 0.000000e+00 : f32
    %20 = vector.broadcast %cst_18 : f32 to vector<30x512xf32>
    %21 = arith.maximumf %19, %20 : vector<30x512xf32>
    %cst_19 = arith.constant dense<0.000000e+00> : vector<10x512xf32>
    %22 = tpu.matmul %4, %21, %cst_19 {dimension_numbers = #tpu.dot_dimension_numbers<[1], [0], [0], [1], [0, 0, 1, 1], [], []>} : vector<10x30xf32>, vector<30x512xf32>, vector<10x512xf32> -> vector<10x512xf32>
    %23 = vector.broadcast %5 : vector<10x1xf32> to vector<10x512xf32>
    %24 = arith.addf %22, %23 : vector<10x512xf32>
    %cst_20 = arith.constant 0.000000e+00 : f32
    %25 = vector.broadcast %cst_20 : f32 to vector<10x512xf32>
    %26 = arith.maximumf %24, %25 : vector<10x512xf32>
    %cst_21 = arith.constant dense<0.000000e+00> : vector<2x512xf32>
    %27 = tpu.matmul %6, %26, %cst_21 {dimension_numbers = #tpu.dot_dimension_numbers<[1], [0], [0], [1], [0, 0, 1, 1], [], []>} : vector<2x10xf32>, vector<10x512xf32>, vector<2x512xf32> -> vector<2x512xf32>
    %28 = vector.broadcast %7 : vector<2x1xf32> to vector<2x512xf32>
    %29 = arith.addf %27, %28 : vector<2x512xf32>
    %c0_22 = arith.constant 0 : index
    %30 = arith.index_cast %9 : i32 to index
    %31 = vector.load %arg10[%c0_22, %30] : memref<2x512xf32, #tpu.memory_space<vmem>>, vector<2x512xf32>
    tpu.vector_store %arg10[%c0_22, %30], %29 {strides = array<i32>} : memref<2x512xf32, #tpu.memory_space<vmem>>, vector<2x512xf32>,
    %c1_i32 = arith.constant 1 : i32
    return
  }
  func.func @transform_0(%arg0: i32) -> (i32, i32) {
    %c0_i32 = arith.constant 0 : i32
    %c0_i32_0 = arith.constant 0 : i32
    return %c0_i32, %arg0 : i32, i32
  }
  func.func @transform_1(%arg0: i32) -> (i32, i32) {
    %c0_i32 = arith.constant 0 : i32
    %c0_i32_0 = arith.constant 0 : i32
    %c0_i32_1 = arith.constant 0 : i32
    return %c0_i32, %c0_i32_0 : i32, i32
  }
  func.func @transform_2(%arg0: i32) -> (i32, i32) {
    %c0_i32 = arith.constant 0 : i32
    %c0_i32_0 = arith.constant 0 : i32
    %c0_i32_1 = arith.constant 0 : i32
    return %c0_i32, %c0_i32_0 : i32, i32
  }
  func.func @transform_3(%arg0: i32) -> (i32, i32) {
    %c0_i32 = arith.constant 0 : i32
    %c0_i32_0 = arith.constant 0 : i32
    %c0_i32_1 = arith.constant 0 : i32
    return %c0_i32, %c0_i32_0 : i32, i32
  }
  func.func @transform_4(%arg0: i32) -> (i32, i32) {
    %c0_i32 = arith.constant 0 : i32
    %c0_i32_0 = arith.constant 0 : i32
    %c0_i32_1 = arith.constant 0 : i32
    return %c0_i32, %c0_i32_0 : i32, i32
  }
  func.func @transform_5(%arg0: i32) -> (i32, i32) {
    %c0_i32 = arith.constant 0 : i32
    %c0_i32_0 = arith.constant 0 : i32
    %c0_i32_1 = arith.constant 0 : i32
    return %c0_i32, %c0_i32_0 : i32, i32
  }
  func.func @transform_6(%arg0: i32) -> (i32, i32) {
    %c0_i32 = arith.constant 0 : i32
    %c0_i32_0 = arith.constant 0 : i32
    %c0_i32_1 = arith.constant 0 : i32
    return %c0_i32, %c0_i32_0 : i32, i32
  }
  func.func @transform_7(%arg0: i32) -> (i32, i32) {
    %c0_i32 = arith.constant 0 : i32
    %c0_i32_0 = arith.constant 0 : i32
    %c0_i32_1 = arith.constant 0 : i32
    return %c0_i32, %c0_i32_0 : i32, i32
  }
  func.func @transform_8(%arg0: i32) -> (i32, i32) {
    %c0_i32 = arith.constant 0 : i32
    %c0_i32_0 = arith.constant 0 : i32
    %c0_i32_1 = arith.constant 0 : i32
    return %c0_i32, %c0_i32_0 : i32, i32
  }
  func.func @transform_9(%arg0: i32) -> (i32, i32) {
    %c0_i32 = arith.constant 0 : i32
    %c0_i32_0 = arith.constant 0 : i32
    return %c0_i32, %arg0 : i32, i32
  }
}

</mosaic_0001>

<bundles_post_ra>
// kernel: mlp_forward.1
= control target key start
LH: loop header
LB: loop body
LE: loop exit
PB: predicated region body
PF: predicated region fallthrough
CT: control target
= control target key end

     0   :  { %vm81_vm0 = vcmask 1046528   ;;  %vm71_vm1 = vcmask 56320   ;;  %v977_v3 = vmov 0.0   ;;  %v978_v9 = vmov 0   ;;  %s1142_s0 = inlined_call_operand.vmem [shape: f32[7,512], index: 0, kind: input, shape index: {}]   ;;  %s1143_s1 = inlined_call_operand.vmem [shape: f32[20,7], index: 1, kind: input, shape index: {}]   ;;  %s1144_s2 = inlined_call_operand.vmem [shape: f32[20,1], index: 2, kind: input, shape index: {}]   ;;  %s1145_s4 = inlined_call_operand.vmem [shape: f32[30,1], index: 4, kind: input, shape index: {}]   ;;  %s1146_s6 = inlined_call_operand.vmem [shape: f32[10,1], index: 6, kind: input, shape index: {}]   ;;  %s1147_s8 = inlined_call_operand.vmem [shape: f32[2,1], index: 8, kind: input, shape index: {}]   ;;  %s1148_s3 = inlined_call_operand.vmem [shape: f32[30,20], index: 3, kind: input, shape index: {}]   ;;  %s1149_s5 = inlined_call_operand.vmem [shape: f32[10,30], index: 5, kind: input, shape index: {}]   ;;  %s1150_s7 = inlined_call_operand.vmem [shape: f32[2,10], index: 7, kind: input, shape index: {}]   ;;  %s1151_s9 = inlined_call_operand.vmem [shape: f32[2,512], index: 9, kind: output, shape index: {}]  }
   0x1   :  { %v53_v0 = vld [vmem:[%s1142_s0 + $0x8] sm:$0x7f]  ;;  %v55_v1 = vld [vmem:[%s1142_s0 + $0x18] sm:$0x7f]  ;;  %v52_v2 = vld [vmem:[%s1142_s0] sm:$0x7f]  ;;  %158 = vmatprep.mubr.f32.mxu0 %v977_v3  ;;  %241 = vmatprep.mubr.f32.mxu1 %v977_v3 }
   0x2   :  { %895 = vmatprep.subr.msk.mxu0 %vm81_vm0, %v53_v0  ;;  %900 = vmatprep.subr.msk.mxu1 %vm81_vm0, %v55_v1  ;;  %v54_v4 = vld [vmem:[%s1142_s0 + $0x10] sm:$0x7f]  ;;  %v32_v5 = vld [vmem:[%s1143_s1] sm:$0xff]  ;;  %v33_v8 = vld [vmem:[%s1143_s1 + $0x8] sm:$0xff]  ;;  %vm305_vm2 = vcmask 1043456   ;;  %vm292_vm3 = vcmask 162816  }
   0x3   :  { %896 = vmatpush1.msk.msra.mxu0 %vm81_vm0, %v52_v2  ;;  %901 = vmatpush1.msk.msra.mxu1 %vm81_vm0, %v54_v4  ;;  %v35_v6 = vld [vmem:[%s1144_s2] sm:$0xff]  ;;  %v37_v7 = vld [vmem:[%s1144_s2 + $0x10] sm:$0xf]  ;;  %v36_v10 = vld [vmem:[%s1144_s2 + $0x8] sm:$0xff]  ;;  %vm529_vm4 = vcmask 1045504   ;;  %vm979_vm5 = vmmov 1  }
   0x4   :  { %897 = vmatmul.mubr.msk.f32.vlgmr.msra.gmra.mrb[0].mxu0 %vm71_vm1, %v32_v5  ;;  %902 = vmatmul.mubr.msk.f32.vlgmr.msra.gmra.mrb[0].mxu1 %vm71_vm1, %v32_v5  ;;  %v42_v11 = vld [vmem:[%s1145_s4] sm:$0xff]  ;;  %v34_v12 = vld [vmem:[%s1143_s1 + $0x10] sm:$0xf]  ;;  %v43_v13 = vld [vmem:[%s1145_s4 + $0x8] sm:$0xff]  ;;  %vm522_vm7 = vcmask 244736   ;;  %vm713_vm8 = vcmask 1041408  }
   0x5   :  { %164 = vmatprep.mubr.f32.mxu0 %v977_v3  ;;  %247 = vmatprep.mubr.f32.mxu1 %v977_v3  ;;  %v44_v14 = vld [vmem:[%s1145_s4 + $0x10] sm:$0xff]  ;;  %v45_v15 = vld [vmem:[%s1145_s4 + $0x18] sm:$0x3f]  ;;  %v48_v16 = vld [vmem:[%s1146_s6] sm:$0xff]  ;;  %vm709_vm10 = vcmask 80896  }
   0x6   :  { %975 = vset.pattern.permute.xlu0 %v978_v9  ;;  %976 = vset.pattern.permute.xlu1 %v978_v9  ;;  %v49_v17 = vld [vmem:[%s1146_s6 + $0x8] sm:$0x3]  ;;  %v51_v18 = vld [vmem:[%s1147_s8] sm:$0x3]  ;;  %v40_v0 = vld [vmem:[%s1148_s3 + $0x10] sm:$0xff] }
   0x7   :  { %58 = vperm.xlu0 %975, %v35_v6   ;;  %68 = vperm.xlu1 %976, %v37_v7   ;;  %v38_v62 = vld [vmem:[%s1148_s3] sm:$0xff]  ;;  %v39_v63 = vld [vmem:[%s1148_s3 + $0x8] sm:$0xff]  ;;  %v41_v1 = vld [vmem:[%s1148_s3 + $0x18] sm:$0x3f] }
   0x8   :  { %898 = vmatmul.mubr.msk.f32.gmra.mrb[2].mxu0 %vm71_vm1, %v33_v8  ;;  %903 = vmatmul.mubr.msk.f32.gmra.mrb[2].mxu1 %vm71_vm1, %v33_v8  ;;  %vm944_vm6 = vmpackc.low %vm529_vm4, %vm979_vm5 }
   0x9   :  { %170 = vmatprep.mubr.f32.mxu0 %v977_v3  ;;  %253 = vmatprep.mubr.f32.mxu1 %v977_v3  ;;  %vm960_vm9 = vmpackc.low %vm713_vm8, %vm979_vm5 }
   0xb   :  { %63 = vperm.xlu0 %975, %v36_v10   ;;  %274 = vperm.xlu1 %976, %v42_v11  }
   0xc   :  { %899 = vmatmul.mubr.msk.f32.gmra.mrb[4].mxu0 %vm71_vm1, %v34_v12  ;;  %904 = vmatmul.mubr.msk.f32.gmra.mrb[4].mxu1 %vm71_vm1, %v34_v12 }
   0xd   :  { %382 = vmatprep.mubr.f32.mxu0 %v977_v3  ;;  %471 = vmatprep.mubr.f32.mxu1 %v977_v3 }
   0xf   :  { %279 = vperm.xlu0 %975, %v43_v13   ;;  %284 = vperm.xlu1 %976, %v44_v14  }
  0x13   :  { %289 = vperm.xlu0 %975, %v45_v15   ;;  %514 = vperm.xlu1 %976, %v48_v16  }
  0x17   :  { %519 = vperm.xlu0 %975, %v49_v17   ;;  %706 = vperm.xlu1 %976, %v51_v18  }
  0x86   :  { %v59_v19 = vpop.permute.xlu0 %58  ;;  %v69_v37 = vpop.permute.xlu1 %68 }
  0x8a   :  { %v64_v24 = vpop.permute.xlu0 %63  ;;  %v275_v7 = vpop.permute.xlu1 %274 }
  0x8e   :  { %v280_v8 = vpop.permute.xlu0 %279 }
  0xd7   :  { %v160_v20 = vpop.f32.mrb[0].mxu0  ;;  %v243_v21 = vpop.f32.mrb[0].mxu1 }
  0xd8   :  { %v162_v22 = vpop.f32.mrb[1].mxu0  ;;  %v245_v23 = vpop.f32.mrb[1].mxu1  ;;  %v161_v25 = vadd.f32 %v160_v20, %v59_v19  ;;  %v244_v26 = vadd.f32 %v243_v21, %v59_v19 }
  0xd9   :  { %v163_v27 = vadd.f32 %v162_v22, %v59_v19  ;;  %v246_v28 = vadd.f32 %v245_v23, %v59_v19 }
  0xda   :  { %v260_v38 = vmax.f32 %v161_v25, 0.0  ;;  %v262_v39 = vmax.f32 %v244_v26, 0.0 }
  0xdb   :  { %v166_v29 = vpop.f32.mrb[2].mxu0  ;;  %v249_v30 = vpop.f32.mrb[2].mxu1  ;;  %v261_v42 = vmax.f32 %v163_v27, 0.0  ;;  %v263_v43 = vmax.f32 %v246_v28, 0.0 }
  0xdc   :  { %v167_v31 = vadd.f32 %v166_v29, %v64_v24  ;;  %v250_v32 = vadd.f32 %v249_v30, %v64_v24  ;;  %v168_v33 = vpop.f32.mrb[3].mxu0  ;;  %v251_v34 = vpop.f32.mrb[3].mxu1 }
  0xdd   :  { %v169_v35 = vadd.f32 %v168_v33, %v64_v24  ;;  %v252_v36 = vadd.f32 %v251_v34, %v64_v24 }
  0xde   :  { %v264_v40 = vmax.f32 %v167_v31, 0.0  ;;  %v266_v41 = vmax.f32 %v250_v32, 0.0 }
  0xdf   :  { %v265_v44 = vmax.f32 %v169_v35, 0.0  ;;  %v267_v45 = vmax.f32 %v252_v36, 0.0  ;;  %v172_v46 = vpop.f32.mrb[4].mxu0  ;;  %v255_v47 = vpop.f32.mrb[4].mxu1 }
  0xe0   :  { %v933_v48 = vpack.c.bf16 %v264_v40, %v260_v38  ;;  %v937_v49 = vpack.c.bf16 %v266_v41, %v262_v39  ;;  %v174_v50 = vpop.f32.mrb[5].mxu0  ;;  %v257_v51 = vpop.f32.mrb[5].mxu1  ;;  %v173_v56 = vadd.f32 %v172_v46, %v69_v37  ;;  %v256_v57 = vadd.f32 %v255_v47, %v69_v37 }
  0xe1   :  { %v931_v52 = vpack.c.bf16 %v265_v44, %v261_v42  ;;  %v935_v53 = vpack.c.bf16 %v267_v45, %v263_v43  ;;  %v175_v54 = vadd.f32 %v174_v50, %v69_v37  ;;  %v258_v55 = vadd.f32 %v257_v51, %v69_v37  ;;  %v285_v35 = vpop.permute.xlu1 %284  ;;  %v290_v38 = vpop.permute.xlu0 %289 }
  0xe2   :  { %v268_v60 = vmax.f32 %v173_v56, 0.0  ;;  %v270_v61 = vmax.f32 %v256_v57, 0.0 }
  0xe3   :  { %v269_v58 = vmax.f32 %v175_v54, 0.0  ;;  %v271_v59 = vmax.f32 %v258_v55, 0.0  ;;  %932 = vmatprep.subr.bf16.mxu0 %v931_v52  ;;  %936 = vmatprep.subr.bf16.mxu1 %v935_v53 }
  0xe4   :  { %934 = vmatpush1.bf16.msra.mxu0 %v933_v48  ;;  %938 = vmatpush1.bf16.msra.mxu1 %v937_v49 }
  0xe5   :  { %905 = vmatprep.subr.msk.mxu0 %vm305_vm2, %v269_v58  ;;  %911 = vmatprep.subr.msk.mxu1 %vm305_vm2, %v271_v59 }
  0xe8   :  { %906 = vmatpush1.msk.msra.mxu0 %vm305_vm2, %v268_v60  ;;  %912 = vmatpush1.msk.msra.mxu1 %vm305_vm2, %v270_v61 }
  0xe9   :  { %907 = vmatmul.mubr.msk.f32.vlgmr.msra.gmra.mrb[6].mxu0 %vm292_vm3, %v38_v62  ;;  %913 = vmatmul.mubr.msk.f32.vlgmr.msra.gmra.mrb[6].mxu1 %vm292_vm3, %v38_v62 }
  0xea   :  { %388 = vmatprep.mubr.f32.mxu0 %v977_v3  ;;  %477 = vmatprep.mubr.f32.mxu1 %v977_v3 }
  0xed   :  { %908 = vmatmul.mubr.msk.f32.gmra.mrb[8].mxu0 %vm292_vm3, %v39_v63  ;;  %914 = vmatmul.mubr.msk.f32.gmra.mrb[8].mxu1 %vm292_vm3, %v39_v63  ;;  %v46_v63 = vld [vmem:[%s1149_s5] sm:$0xff] }
  0xee   :  { %394 = vmatprep.mubr.f32.mxu0 %v977_v3  ;;  %483 = vmatprep.mubr.f32.mxu1 %v977_v3 }
  0xf1   :  { %909 = vmatmul.mubr.msk.f32.gmra.mrb[10].mxu0 %vm292_vm3, %v40_v0  ;;  %915 = vmatmul.mubr.msk.f32.gmra.mrb[10].mxu1 %vm292_vm3, %v40_v0  ;;  %v47_v0 = vld [vmem:[%s1149_s5 + $0x8] sm:$0x3] }
  0xf2   :  { %400 = vmatprep.mubr.f32.mxu0 %v977_v3  ;;  %489 = vmatprep.mubr.f32.mxu1 %v977_v3 }
  0xf5   :  { %910 = vmatmul.mubr.msk.f32.gmra.mrb[12].mxu0 %vm292_vm3, %v41_v1  ;;  %916 = vmatmul.mubr.msk.f32.gmra.mrb[12].mxu1 %vm292_vm3, %v41_v1 }
  0xf6   :  { %606 = vmatprep.mubr.f32.mxu0 %v977_v3  ;;  %683 = vmatprep.mubr.f32.mxu1 %v977_v3 }
 0x1bc   :  { %v384_v2 = vpop.f32.mrb[6].mxu0  ;;  %v473_v4 = vpop.f32.mrb[6].mxu1 }
 0x1bd   :  { %v386_v5 = vpop.f32.mrb[7].mxu0  ;;  %v475_v6 = vpop.f32.mrb[7].mxu1  ;;  %v385_v9 = vadd.f32 %v384_v2, %v275_v7  ;;  %v474_v10 = vadd.f32 %v473_v4, %v275_v7 }
 0x1be   :  { %v387_v11 = vadd.f32 %v386_v5, %v275_v7  ;;  %v476_v12 = vadd.f32 %v475_v6, %v275_v7  ;;  %v515_v6 = vpop.permute.xlu1 %514  ;;  %v520_v7 = vpop.permute.xlu0 %519 }
 0x1bf   :  { %v496_v21 = vmax.f32 %v385_v9, 0.0  ;;  %v498_v22 = vmax.f32 %v474_v10, 0.0 }
 0x1c0   :  { %v390_v13 = vpop.f32.mrb[8].mxu0  ;;  %v479_v14 = vpop.f32.mrb[8].mxu1  ;;  %v497_v25 = vmax.f32 %v387_v11, 0.0  ;;  %v499_v26 = vmax.f32 %v476_v12, 0.0 }
 0x1c1   :  { %v391_v15 = vadd.f32 %v390_v13, %v280_v8  ;;  %v480_v16 = vadd.f32 %v479_v14, %v280_v8  ;;  %v392_v17 = vpop.f32.mrb[9].mxu0  ;;  %v481_v18 = vpop.f32.mrb[9].mxu1 }
 0x1c2   :  { %v393_v19 = vadd.f32 %v392_v17, %v280_v8  ;;  %v482_v20 = vadd.f32 %v481_v18, %v280_v8 }
 0x1c3   :  { %v500_v23 = vmax.f32 %v391_v15, 0.0  ;;  %v502_v24 = vmax.f32 %v480_v16, 0.0 }
 0x1c4   :  { %v501_v27 = vmax.f32 %v393_v19, 0.0  ;;  %v503_v28 = vmax.f32 %v482_v20, 0.0  ;;  %v396_v29 = vpop.f32.mrb[10].mxu0  ;;  %v485_v30 = vpop.f32.mrb[10].mxu1 }
 0x1c5   :  { %v941_v31 = vpack.c.bf16 %v500_v23, %v496_v21  ;;  %v951_v32 = vpack.c.bf16 %v502_v24, %v498_v22  ;;  %v398_v33 = vpop.f32.mrb[11].mxu0  ;;  %v487_v34 = vpop.f32.mrb[11].mxu1  ;;  %v397_v39 = vadd.f32 %v396_v29, %v285_v35  ;;  %v486_v40 = vadd.f32 %v485_v30, %v285_v35 }
 0x1c6   :  { %v939_v36 = vpack.c.bf16 %v501_v27, %v497_v25  ;;  %v949_v37 = vpack.c.bf16 %v503_v28, %v499_v26  ;;  %v399_v41 = vadd.f32 %v398_v33, %v285_v35  ;;  %v488_v42 = vadd.f32 %v487_v34, %v285_v35 }
 0x1c7   :  { %v504_v51 = vmax.f32 %v397_v39, 0.0  ;;  %v506_v52 = vmax.f32 %v486_v40, 0.0  ;;  %v877_v34 = vlaneseq }
 0x1c8   :  { %v402_v43 = vpop.f32.mrb[12].mxu0  ;;  %v491_v44 = vpop.f32.mrb[12].mxu1  ;;  %940 = vmatprep.subr.bf16.mxu0 %v939_v36  ;;  %950 = vmatprep.subr.bf16.mxu1 %v949_v37  ;;  %v505_v55 = vmax.f32 %v399_v41, 0.0  ;;  %v507_v56 = vmax.f32 %v488_v42, 0.0 }
 0x1c9   :  { %v403_v45 = vadd.f32 %v402_v43, %v290_v38  ;;  %v492_v46 = vadd.f32 %v491_v44, %v290_v38  ;;  %v404_v47 = vpop.f32.mrb[13].mxu0  ;;  %v493_v48 = vpop.f32.mrb[13].mxu1  ;;  %942 = vmatpush1.bf16.msra.mxu0 %v941_v31  ;;  %952 = vmatpush1.bf16.msra.mxu1 %v951_v32  ;;  %v50_v31 = vld [vmem:[%s1150_s7] sm:$0x3]  ;;  %v980_v32 = vmov 1983009808  }
 0x1ca   :  { %v405_v49 = vadd.f32 %v404_v47, %v290_v38  ;;  %v494_v50 = vadd.f32 %v493_v48, %v290_v38  ;;  %v875_v33 = vunpack.c.l.s4 %v980_v32  ;;  %v878_v36 = vshrl.u32 %v877_v34, 7  ;;  %v707_v37 = vpop.permute.xlu1 %706 }
 0x1cb   :  { %v508_v53 = vmax.f32 %v403_v45, 0.0  ;;  %v510_v54 = vmax.f32 %v492_v46, 0.0 }
 0x1cc   :  { %v509_v57 = vmax.f32 %v405_v49, 0.0  ;;  %v511_v58 = vmax.f32 %v494_v50, 0.0  ;;  %v876_v35 = vunpack.c.0.s8 %v875_v33 }
 0x1cd   :  { %v946_v59 = vpack.c.bf16 %v508_v53, %v504_v51  ;;  %v956_v60 = vpack.c.bf16 %v510_v54, %v506_v52 }
 0x1ce   :  { %v943_v61 = vpack.c.bf16 %v509_v57, %v505_v55  ;;  %v953_v62 = vpack.c.bf16 %v511_v58, %v507_v56  ;;  %v879_v45 = vsub.s32 %v876_v35, %v878_v36 }
 0x1d0   :  { %945 = vmatprep.subr.msk.bf16.mxu0 %vm944_vm6, %v943_v61  ;;  %955 = vmatprep.subr.msk.bf16.mxu1 %vm944_vm6, %v953_v62 }
 0x1d1   :  { %948 = vmatpush1.bf16.msk.msra.mxu0 %vm944_vm6, %v946_v59  ;;  %958 = vmatpush1.bf16.msk.msra.mxu1 %vm944_vm6, %v956_v60 }
 0x1d4   :  { %919 = vmatmul.mubr.msk.f32.vlgmr.msra.gmra.mrb[14].mxu0 %vm522_vm7, %v46_v63  ;;  %923 = vmatmul.mubr.msk.f32.vlgmr.msra.gmra.mrb[14].mxu1 %vm522_vm7, %v46_v63 }
 0x1d5   :  { %612 = vmatprep.mubr.f32.mxu0 %v977_v3  ;;  %689 = vmatprep.mubr.f32.mxu1 %v977_v3 }
 0x1d8   :  { %920 = vmatmul.mubr.msk.f32.gmra.mrb[16].mxu0 %vm522_vm7, %v47_v0  ;;  %924 = vmatmul.mubr.msk.f32.gmra.mrb[16].mxu1 %vm522_vm7, %v47_v0 }
 0x1d9   :  { %790 = vmatprep.mubr.f32.mxu0 %v977_v3  ;;  %861 = vmatprep.mubr.f32.mxu1 %v977_v3 }
 0x2a7   :  { %v608_v1 = vpop.f32.mrb[14].mxu0  ;;  %v685_v2 = vpop.f32.mrb[14].mxu1 }
 0x2a8   :  { %v610_v4 = vpop.f32.mrb[15].mxu0  ;;  %v687_v5 = vpop.f32.mrb[15].mxu1  ;;  %v609_v8 = vadd.f32 %v608_v1, %v515_v6  ;;  %v686_v9 = vadd.f32 %v685_v2, %v515_v6 }
 0x2a9   :  { %v611_v10 = vadd.f32 %v610_v4, %v515_v6  ;;  %v688_v11 = vadd.f32 %v687_v5, %v515_v6 }
 0x2aa   :  { %v696_v3 = vmax.f32 %v609_v8, 0.0  ;;  %v698_v20 = vmax.f32 %v686_v9, 0.0 }
 0x2ab   :  { %v614_v12 = vpop.f32.mrb[16].mxu0  ;;  %v691_v13 = vpop.f32.mrb[16].mxu1  ;;  %v697_v23 = vmax.f32 %v611_v10, 0.0  ;;  %v699_v24 = vmax.f32 %v688_v11, 0.0 }
 0x2ac   :  { %v615_v14 = vadd.f32 %v614_v12, %v520_v7  ;;  %v692_v15 = vadd.f32 %v691_v13, %v520_v7  ;;  %v616_v16 = vpop.f32.mrb[17].mxu0  ;;  %v693_v17 = vpop.f32.mrb[17].mxu1 }
 0x2ad   :  { %v617_v18 = vadd.f32 %v616_v16, %v520_v7  ;;  %v694_v19 = vadd.f32 %v693_v17, %v520_v7 }
 0x2ae   :  { %v700_v21 = vmax.f32 %v615_v14, 0.0  ;;  %v702_v22 = vmax.f32 %v692_v15, 0.0 }
 0x2af   :  { %v701_v25 = vmax.f32 %v617_v18, 0.0  ;;  %v703_v26 = vmax.f32 %v694_v19, 0.0 }
 0x2b0   :  { %v962_v27 = vpack.c.bf16 %v700_v21, %v696_v3  ;;  %v968_v28 = vpack.c.bf16 %v702_v22, %v698_v20 }
 0x2b1   :  { %v959_v29 = vpack.c.bf16 %v701_v25, %v697_v23  ;;  %v965_v30 = vpack.c.bf16 %v703_v26, %v699_v24 }
 0x2b3   :  { %961 = vmatprep.subr.msk.bf16.mxu0 %vm960_vm9, %v959_v29  ;;  %967 = vmatprep.subr.msk.bf16.mxu1 %vm960_vm9, %v965_v30 }
 0x2b4   :  { %964 = vmatpush1.bf16.msk.msra.mxu0 %vm960_vm9, %v962_v27  ;;  %970 = vmatpush1.bf16.msk.msra.mxu1 %vm960_vm9, %v968_v28 }
 0x2b7   :  { %927 = vmatmul.mubr.msk.f32.vlgmr.msra.gmra.mrb[18].mxu0 %vm709_vm10, %v50_v31  ;;  %930 = vmatmul.mubr.msk.f32.vlgmr.msra.gmra.mrb[18].mxu1 %vm709_vm10, %v50_v31 }
 0x38a   :  { %v792_v38 = vpop.f32.mrb[18].mxu0  ;;  %v863_v39 = vpop.f32.mrb[18].mxu1 }
 0x38b   :  { %v793_v40 = vadd.f32 %v792_v38, %v707_v37  ;;  %v864_v41 = vadd.f32 %v863_v39, %v707_v37  ;;  %v794_v42 = vpop.f32.mrb[19].mxu0  ;;  %v865_v43 = vpop.f32.mrb[19].mxu1 }
 0x38c   :  { %v795_v44 = vadd.f32 %v794_v42, %v707_v37  ;;  %v866_v46 = vadd.f32 %v865_v43, %v707_v37 }
 0x38e   :  { %v872_v47 = vcombine.low %v793_v40, %v795_v44  ;;  %v873_v48 = vcombine.low %v864_v41, %v866_v46 }
 0x390   :  { %v880_v49 = vrot.slane %v872_v47, %v879_v45  ;;  %v887_v50 = vrot.slane %v873_v48, %v879_v45 }
 0x392   :  { %v888_v51 = vcombine.low %v880_v49, %v887_v50 }
 0x394   :  { %890 = vst [vmem:[%s1151_s9] sm:$0xff] %v888_v51 }

</bundles_post_ra>
